<compile_context>
chip_gen: v6e
topology: v6e:2x2x1
jax: 0.10.0
libtpu: 0.0.40
codegen_flags: <defaults>
</compile_context>

<pallas_src>
import functools

import jax
import jax.numpy as jnp
from jax.experimental import pallas as pl
from jax.experimental.pallas import tpu as pltpu

EPS = 1e-5  # torch.nn.GroupNorm default


def _prenorm_kernel(x_ref, g_ref, b_ref, o_ref, s_ref, ss_ref, *,
                    inv_d, eps, affine_dtype, epilogue):
    """Two-phase GroupNorm(1) block kernel.

    grid = (row_blocks, 2 phases, d_blocks).  Phase 0 accumulates per-row
    sum / sum-of-squares into f32 VMEM scratch across the d blocks; phase 1
    re-reads each d block and writes the fused normalize + affine (+ epilogue).
    """
    p = pl.program_id(1)
    k = pl.program_id(2)

    @pl.when((p == 0) & (k == 0))
    def _init():
        s_ref[...] = jnp.zeros_like(s_ref)
        ss_ref[...] = jnp.zeros_like(ss_ref)

    @pl.when(p == 0)
    def _stats():
        # Fresh f32 cast for this pass only; no block-sized f32 temp is kept
        # alive into the output pass.
        xf = x_ref[...].astype(jnp.float32)
        s_ref[...] += jnp.sum(xf, axis=1, keepdims=True)
        ss_ref[...] += jnp.sum(xf * xf, axis=1, keepdims=True)
        # TODO(synk): on v7x (VALU-slot bound at 3.2 TB/s HBM) offload these
        # row reductions to the idle MXU via jnp.dot(xf, ones((td, 1)),
        # precision=HIGHEST); kept on the VPU/XLU here for lowering safety.

    @pl.when(p == 1)
    def _write():
        mean = s_ref[...] * inv_d                                  # (bn, 1) f32
        var = jnp.maximum(ss_ref[...] * inv_d - mean * mean, 0.0)  # clamp >= 0
        inv = jax.lax.rsqrt(var + eps)
        scale = inv.astype(affine_dtype)                           # (bn, 1)
        shift = (-mean * inv).astype(affine_dtype)                 # (bn, 1)
        x = x_ref[...].astype(affine_dtype)    # second, independent cast of x
        y = ((x * scale + shift) * g_ref[...].astype(affine_dtype)
             + b_ref[...].astype(affine_dtype))
        if epilogue is not None:
            y = epilogue(y)                    # fused elementwise `fn`
        o_ref[...] = y.astype(o_ref.dtype)


def _largest_lane_tile(D, cap_elems):
    """Largest multiple-of-128 divisor of D that is <= cap_elems (>= 128)."""
    m = D // 128
    cap = max(1, cap_elems // 128)
    best = 1
    d = 1
    while d * d <= m:
        if m % d == 0:
            if d <= cap:
                best = max(best, d)
            q = m // d
            if q <= cap:
                best = max(best, q)
        d += 1
    return best * 128


def _pick_block_rows(n_rows, block_row_bytes, target_bytes):
    """Rows (samples) per grid step: big enough to amortize the ~0.35us/step
    overhead, small enough for VMEM, and leaving >=2 row blocks for megacore."""
    bn = max(1, int(target_bytes // max(block_row_bytes, 1)))
    if n_rows >= 16:
        # Keep >= 2 row blocks so the "parallel" axis can shard across the two
        # TensorCores of a v7x chip (no effect on 1-TC v5e/v6e).
        half = (n_rows // 2) - ((n_rows // 2) % 8)
        bn = min(bn, max(8, half))
    if bn >= n_rows:
        return n_rows                  # full-dim block shape is always legal
    if bn >= 8:
        return bn - (bn % 8)           # keep (8,128) sublane tiles full
    return n_rows if n_rows <= 8 else 8


def prenorm(x, gamma, beta, fn=None, *, fuse_fn=True, block_d_cap=None):
    """PreNorm forward: fn(GroupNorm(1, C)(x)) for NCHW `x`.

    `fn` defaults to identity.  If `fuse_fn` is True, `fn` must be an
    elementwise jnp function and is fused into the kernel epilogue (saves a
    full HBM read+write); otherwise it is applied to the kernel output.
    """
    N, C, H, W = x.shape
    D = C * H * W
    if D % 128 != 0:
        # TODO(synk): pad the lane axis (with masked statistics) for shapes
        # where C*H*W is not a multiple of 128.
        raise ValueError(f"C*H*W must be a multiple of 128, got {D}")

    # --- chip-aware budgets ---------------------------------------------
    try:
        kind = jax.devices()[0].device_kind.lower()
    except Exception:
        kind = ""
    is_v7 = "v7" in kind
    is_v5 = "v5" in kind
    # v7x: 64 MiB VMEM -> smaller blocks + lower scoped limit; v5e/v6e: 128 MiB.
    target_block_bytes = (3 << 20) if is_v7 else (6 << 20)
    vmem_limit_bytes = (40 << 20) if is_v7 else (64 << 20)
    # bf16 affine pass only where the VALU is bf16-capable (v6e/v7x, not v5e).
    affine_dtype = (jnp.bfloat16
                    if (x.dtype == jnp.bfloat16 and not is_v5)
                    else jnp.float32)

    # --- tiling -----------------------------------------------------------
    itemsize = x.dtype.itemsize
    if block_d_cap is not None:
        cap_elems = max(128, min(int(block_d_cap), D))
    else:
        cap_elems = max(128, target_block_bytes // (8 * itemsize))
    td = D if D <= cap_elems else _largest_lane_tile(D, cap_elems)
    kd = D // td
    bn = _pick_block_rows(N, td * itemsize, target_block_bytes)
    grid = (pl.cdiv(N, bn), 2, kd)

    # --- operands ----------------------------------------------------------
    x2 = x.reshape(N, D)
    # Per-element affine rows (channel c covers lanes [c*H*W, (c+1)*H*W)),
    # stored in the input dtype to halve their VMEM footprint for bf16 inputs.
    g2 = jnp.repeat(gamma.astype(x.dtype), H * W).reshape(1, D)
    b2 = jnp.repeat(beta.astype(x.dtype), H * W).reshape(1, D)

    epilogue = fn if (fn is not None and fuse_fn) else None
    kernel = functools.partial(
        _prenorm_kernel, inv_d=1.0 / D, eps=EPS,
        affine_dtype=affine_dtype, epilogue=epilogue)

    out = pl.pallas_call(
        kernel,
        out_shape=jax.ShapeDtypeStruct((N, D), x.dtype),
        grid=grid,
        in_specs=[
            pl.BlockSpec((bn, td), lambda r, p, k: (r, k)),
            # gamma/beta stay pinned to d-block 0 during the stats phase (no
            # DMA churn); they only walk the d blocks in the write phase.
            pl.BlockSpec((1, td), lambda r, p, k: (0, k * p)),
            pl.BlockSpec((1, td), lambda r, p, k: (0, k * p)),
        ],
        # Output stays pinned to d-block 0 during the stats phase so no stale
        # buffer is ever flushed; it is fully written during the write phase.
        out_specs=pl.BlockSpec((bn, td), lambda r, p, k: (r, k * p)),
        scratch_shapes=[
            pltpu.VMEM((bn, 1), jnp.float32),   # per-row sum
            pltpu.VMEM((bn, 1), jnp.float32),   # per-row sum of squares
        ],
        compiler_params=pltpu.CompilerParams(
            dimension_semantics=("parallel", "arbitrary", "arbitrary"),
            vmem_limit_bytes=vmem_limit_bytes,
        ),
    )(x2, g2, b2)

    y = out.reshape(N, C, H, W)
    if fn is not None and not fuse_fn:
        y = fn(y)   # non-elementwise `fn` falls back to plain JAX
    return y


def _reference(x, gamma, beta, fn=None):
    xf = x.astype(jnp.float32)
    mean = jnp.mean(xf, axis=(1, 2, 3), keepdims=True)
    var = jnp.mean((xf - mean) ** 2, axis=(1, 2, 3), keepdims=True)
    xn = (xf - mean) * jax.lax.rsqrt(var + EPS)
    y = xn * gamma.reshape(1, -1, 1, 1) + beta.reshape(1, -1, 1, 1)
    return fn(y) if fn is not None else y


if __name__ == "__main__":
    key = jax.random.PRNGKey(0)
    kx, kg, kb = jax.random.split(key, 3)

    N, C, H, W = 2, 4, 16, 16
    x = jax.random.normal(kx, (N, C, H, W), dtype=jnp.float32)
    # nn.GroupNorm default init is weight=1, bias=0; use deterministic random
    # affine params so the per-channel path is exercised.
    gamma = 1.0 + 0.1 * jax.random.normal(kg, (C,), dtype=jnp.float32)
    beta = 0.1 * jax.random.normal(kb, (C,), dtype=jnp.float32)

    # 1) default path (single d block per row block)
    y = jax.block_until_ready(prenorm(x, gamma, beta))
    ref = _reference(x, gamma, beta)
    assert jnp.allclose(y, ref, atol=1e-4, rtol=1e-5), "mismatch (default path)"

    # 2) reduction-tiled path (multiple d blocks, two-phase stats)
    y_t = jax.block_until_ready(prenorm(x, gamma, beta, block_d_cap=256))
    assert jnp.allclose(y_t, ref, atol=1e-4, rtol=1e-5), "mismatch (d-tiled path)"

    # 3) elementwise `fn` fused into the kernel epilogue
    y_fn = jax.block_until_ready(prenorm(x, gamma, beta, fn=jnp.tanh))
    ref_fn = _reference(x, gamma, beta, fn=jnp.tanh)
    assert jnp.allclose(y_fn, ref_fn, atol=1e-4, rtol=1e-5), "mismatch (fused fn)"

    # 4) bf16 input (bf16 affine pass on v6e/v7x, f32 pass on v5e)
    x_bf16 = x.astype(jnp.bfloat16)
    y_bf = jax.block_until_ready(prenorm(x_bf16, gamma, beta))
    ref_bf = _reference(x_bf16, gamma, beta)
    assert jnp.allclose(y_bf.astype(jnp.float32), ref_bf, atol=5e-2, rtol=5e-2), \
        "mismatch (bf16 path)"

    print("KERNEL_OK")
</pallas_src>

<mosaic_0001>
module attributes {stable_mosaic.version = 11 : i64} {
  func.func @_prenorm_kernel(%arg0: i32, %arg1: i32, %arg2: i32, %arg3: memref<2x1024xf32, #tpu.memory_space<vmem>>, %arg4: memref<1x1024xf32, #tpu.memory_space<vmem>>, %arg5: memref<1x1024xf32, #tpu.memory_space<vmem>>, %arg6: memref<2x1024xf32, #tpu.memory_space<vmem>>, %arg7: memref<2x1xf32, #tpu.memory_space<vmem>>, %arg8: memref<2x1xf32, #tpu.memory_space<vmem>>) attributes {dimension_semantics = [#tpu.dimension_semantics<parallel>, #tpu.dimension_semantics<arbitrary>, #tpu.dimension_semantics<arbitrary>], iteration_bounds = array<i64: 1, 2, 1>, scalar_prefetch = 0 : i64, scratch_operands = 2 : i64, tpu.core_type = #tpu.core_type<tc>, window_params = [{transform_indices = @transform_0, window_bounds = array<i64: 2, 1024>}, {transform_indices = @transform_1, window_bounds = array<i64: 1, 1024>}, {transform_indices = @transform_2, window_bounds = array<i64: 1, 1024>}, {transform_indices = @transform_3, window_bounds = array<i64: 2, 1024>}]} {
    %c0_i32 = arith.constant 0 : i32
    %0 = arith.cmpi eq, %arg1, %c0_i32 : i32
    %c0_i32_0 = arith.constant 0 : i32
    %1 = arith.cmpi eq, %arg2, %c0_i32_0 : i32
    %2 = arith.andi %0, %1 : i1
    %3 = arith.extui %2 : i1 to i32
    %c0_i32_1 = arith.constant 0 : i32
    %4 = arith.cmpi ne, %3, %c0_i32_1 : i32
    scf.if %4 {
      %cst = arith.constant 0.000000e+00 : f32
      %11 = vector.broadcast %cst : f32 to vector<2x1xf32>
      %c0 = arith.constant 0 : index
      %c0_5 = arith.constant 0 : index
      %12 = vector.load %arg7[%c0, %c0_5] : memref<2x1xf32, #tpu.memory_space<vmem>>, vector<2x1xf32>
      tpu.vector_store %arg7[%c0, %c0_5], %11 {strides = array<i32>} : memref<2x1xf32, #tpu.memory_space<vmem>>, vector<2x1xf32>,
      %cst_6 = arith.constant 0.000000e+00 : f32
      %13 = vector.broadcast %cst_6 : f32 to vector<2x1xf32>
      %c0_7 = arith.constant 0 : index
      %c0_8 = arith.constant 0 : index
      %14 = vector.load %arg8[%c0_7, %c0_8] : memref<2x1xf32, #tpu.memory_space<vmem>>, vector<2x1xf32>
      tpu.vector_store %arg8[%c0_7, %c0_8], %13 {strides = array<i32>} : memref<2x1xf32, #tpu.memory_space<vmem>>, vector<2x1xf32>,
    } else {
    }
    %c0_i32_2 = arith.constant 0 : i32
    %5 = arith.cmpi eq, %arg1, %c0_i32_2 : i32
    %6 = arith.extui %5 : i1 to i32
    %c0_i32_3 = arith.constant 0 : i32
    %7 = arith.cmpi ne, %6, %c0_i32_3 : i32
    scf.if %7 {
      %c0 = arith.constant 0 : index
      %c0_5 = arith.constant 0 : index
      %11 = vector.load %arg3[%c0, %c0_5] : memref<2x1024xf32, #tpu.memory_space<vmem>>, vector<2x1024xf32>
      %c0_6 = arith.constant 0 : index
      %c0_7 = arith.constant 0 : index
      %12 = vector.load %arg7[%c0_6, %c0_7] : memref<2x1xf32, #tpu.memory_space<vmem>>, vector<2x1xf32>
      %cst = arith.constant dense<0.000000e+00> : vector<2xf32>
      %13 = vector.multi_reduction <add>, %11, %cst [1] : vector<2x1024xf32> to vector<2xf32>
      %14 = vector.shape_cast %13 : vector<2xf32> to vector<2x1xf32>
      %15 = arith.addf %12, %14 : vector<2x1xf32>
      %c0_8 = arith.constant 0 : index
      %c0_9 = arith.constant 0 : index
      %16 = vector.load %arg7[%c0_8, %c0_9] : memref<2x1xf32, #tpu.memory_space<vmem>>, vector<2x1xf32>
      tpu.vector_store %arg7[%c0_8, %c0_9], %15 {strides = array<i32>} : memref<2x1xf32, #tpu.memory_space<vmem>>, vector<2x1xf32>,
      %c0_10 = arith.constant 0 : index
      %c0_11 = arith.constant 0 : index
      %17 = vector.load %arg8[%c0_10, %c0_11] : memref<2x1xf32, #tpu.memory_space<vmem>>, vector<2x1xf32>
      %18 = arith.mulf %11, %11 : vector<2x1024xf32>
      %cst_12 = arith.constant dense<0.000000e+00> : vector<2xf32>
      %19 = vector.multi_reduction <add>, %18, %cst_12 [1] : vector<2x1024xf32> to vector<2xf32>
      %20 = vector.shape_cast %19 : vector<2xf32> to vector<2x1xf32>
      %21 = arith.addf %17, %20 : vector<2x1xf32>
      %c0_13 = arith.constant 0 : index
      %c0_14 = arith.constant 0 : index
      %22 = vector.load %arg8[%c0_13, %c0_14] : memref<2x1xf32, #tpu.memory_space<vmem>>, vector<2x1xf32>
      tpu.vector_store %arg8[%c0_13, %c0_14], %21 {strides = array<i32>} : memref<2x1xf32, #tpu.memory_space<vmem>>, vector<2x1xf32>,
    } else {
    }
    %c1_i32 = arith.constant 1 : i32
    %8 = arith.cmpi eq, %arg1, %c1_i32 : i32
    %9 = arith.extui %8 : i1 to i32
    %c0_i32_4 = arith.constant 0 : i32
    %10 = arith.cmpi ne, %9, %c0_i32_4 : i32
    scf.if %10 {
      %c0 = arith.constant 0 : index
      %c0_5 = arith.constant 0 : index
      %11 = vector.load %arg7[%c0, %c0_5] : memref<2x1xf32, #tpu.memory_space<vmem>>, vector<2x1xf32>
      %cst = arith.constant 9.765625E-4 : f32
      %12 = vector.broadcast %cst : f32 to vector<2x1xf32>
      %13 = arith.mulf %11, %12 : vector<2x1xf32>
      %c0_6 = arith.constant 0 : index
      %c0_7 = arith.constant 0 : index
      %14 = vector.load %arg8[%c0_6, %c0_7] : memref<2x1xf32, #tpu.memory_space<vmem>>, vector<2x1xf32>
      %cst_8 = arith.constant 9.765625E-4 : f32
      %15 = vector.broadcast %cst_8 : f32 to vector<2x1xf32>
      %16 = arith.mulf %14, %15 : vector<2x1xf32>
      %17 = arith.mulf %13, %13 : vector<2x1xf32>
      %18 = arith.subf %16, %17 : vector<2x1xf32>
      %cst_9 = arith.constant 0.000000e+00 : f32
      %19 = vector.broadcast %cst_9 : f32 to vector<2x1xf32>
      %20 = arith.maximumf %18, %19 : vector<2x1xf32>
      %cst_10 = arith.constant 9.99999974E-6 : f32
      %21 = vector.broadcast %cst_10 : f32 to vector<2x1xf32>
      %22 = arith.addf %20, %21 : vector<2x1xf32>
      %23 = math.rsqrt %22 : vector<2x1xf32>
      %cst_11 = arith.constant 0.000000e+00 : f32
      %24 = vector.broadcast %cst_11 : f32 to vector<2x1xf32>
      %25 = arith.subf %24, %13 : vector<2x1xf32>
      %26 = arith.mulf %25, %23 : vector<2x1xf32>
      %c0_12 = arith.constant 0 : index
      %c0_13 = arith.constant 0 : index
      %27 = vector.load %arg3[%c0_12, %c0_13] : memref<2x1024xf32, #tpu.memory_space<vmem>>, vector<2x1024xf32>
      %28 = vector.broadcast %23 : vector<2x1xf32> to vector<2x1024xf32>
      %29 = arith.mulf %27, %28 : vector<2x1024xf32>
      %30 = vector.broadcast %26 : vector<2x1xf32> to vector<2x1024xf32>
      %31 = arith.addf %29, %30 : vector<2x1024xf32>
      %c0_14 = arith.constant 0 : index
      %c0_15 = arith.constant 0 : index
      %32 = vector.load %arg4[%c0_14, %c0_15] : memref<1x1024xf32, #tpu.memory_space<vmem>>, vector<1x1024xf32>
      %33 = vector.broadcast %32 : vector<1x1024xf32> to vector<2x1024xf32>
      %34 = arith.mulf %31, %33 : vector<2x1024xf32>
      %c0_16 = arith.constant 0 : index
      %c0_17 = arith.constant 0 : index
      %35 = vector.load %arg5[%c0_16, %c0_17] : memref<1x1024xf32, #tpu.memory_space<vmem>>, vector<1x1024xf32>
      %36 = vector.broadcast %35 : vector<1x1024xf32> to vector<2x1024xf32>
      %37 = arith.addf %34, %36 : vector<2x1024xf32>
      %c0_18 = arith.constant 0 : index
      %c0_19 = arith.constant 0 : index
      %38 = vector.load %arg6[%c0_18, %c0_19] : memref<2x1024xf32, #tpu.memory_space<vmem>>, vector<2x1024xf32>
      tpu.vector_store %arg6[%c0_18, %c0_19], %37 {strides = array<i32>} : memref<2x1024xf32, #tpu.memory_space<vmem>>, vector<2x1024xf32>,
    } else {
    }
    return
  }
  func.func @transform_0(%arg0: i32, %arg1: i32, %arg2: i32) -> (i32, i32) {
    %c0_i32 = arith.constant 0 : i32
    return %arg0, %arg2 : i32, i32
  }
  func.func @transform_1(%arg0: i32, %arg1: i32, %arg2: i32) -> (i32, i32) {
    %0 = arith.muli %arg2, %arg1 : i32
    %c0_i32 = arith.constant 0 : i32
    %c0_i32_0 = arith.constant 0 : i32
    return %c0_i32, %0 : i32, i32
  }
  func.func @transform_2(%arg0: i32, %arg1: i32, %arg2: i32) -> (i32, i32) {
    %0 = arith.muli %arg2, %arg1 : i32
    %c0_i32 = arith.constant 0 : i32
    %c0_i32_0 = arith.constant 0 : i32
    return %c0_i32, %0 : i32, i32
  }
  func.func @transform_3(%arg0: i32, %arg1: i32, %arg2: i32) -> (i32, i32) {
    %0 = arith.muli %arg2, %arg1 : i32
    %c0_i32 = arith.constant 0 : i32
    return %arg0, %0 : i32, i32
  }
}

</mosaic_0001>

<bundles_post_ra>
// kernel: tpu_custom_call.1
= control target key start
LH: loop header
LB: loop body
LE: loop exit
PB: predicated region body
PF: predicated region fallthrough
CT: control target
= control target key end

     0   :  { %8 = vsyncpa [#allocation5], 0  ;;  %s1149_s0 = inlined_call_operand.hbm [shape: f32[2,1024], index: 0, kind: input, shape index: {}]   ;;  %s1150_s1 = inlined_call_operand.hbm [shape: f32[1,1024], index: 1, kind: input, shape index: {}]   ;;  %s1151_s2 = inlined_call_operand.hbm [shape: f32[1,1024], index: 2, kind: input, shape index: {}]   ;;  %s1152_s3 = inlined_call_operand.hbm [shape: f32[2,1024], index: 3, kind: output, shape index: {}]  }
   0x1   :  { %9 = vsyncpa [#allocation8], 0 }
   0x2   :  { %11 = vsyncpa [#allocation8 + $0x1], 0 }
   0x3   :  { %12 = vsyncpa [#allocation6], 0 }
   0x4   :  { %14 = vsyncpa [#allocation6 + $0x1], 0  ;;  %s1024_s12 = smov 0   ;;  %s1026_s13 = smov 0  }
   0x5   :  { %s1028_s14 = smov 0  }
   0x6 LB: > { %s995_s15 = smov [#allocation7]   ;;  %s760_s17 = sadd.s32 4294967294, %s993_s14   ;;  %s993_s14 = sphi %s1028_s14, %s20_s14   ;;  %s989_s13 = sphi %s1026_s13, %s1165_s13   ;;  %s985_s12 = sphi %s1024_s12, %s1164_s12  }
   0x7   : > { %s200_s16 = sshll.u32 %s995_s15, 4  ;;  %p810_p1 = scmp.lt.s32.totalorder %s993_s14, 2  ;;  %s201_s16 = int_to_ptr.vmem [resolvable:$true] %s200_s16 }
   0x8   : > { %p811_p2 = scmp.eq.s32.totalorder %s993_s14, 0  ;;  %s187_s18 = sand.u32 1, %s993_s14  }
   0x9   : > { %s1048_s20 = scalar_lea.sflag [#allocation8], %s187_s18  ;;  %s868_s21 = scalar_lea.vmem %s201_s16, 128 }
   0xa   : > { %p1044_p3 = pnand %p811_p2, %p810_p1  ;;  %p869_p5 = scmp.ne.s32.totalorder %s201_s16, %s868_s21 }
   0xb   : > { %s875_s22 = scalar_lea.vmem %s201_s16, 256  ;;  %p876_p8 = scmp.lt.s32.totalorder %s201_s16, %s201_s16 }
   0xc   : > { %p859_p4 = pneg %p1044_p3  ;;  %p877_p9 = scmp.lt.s32.totalorder %s875_s22, %s868_s21 }
   0xe   : > { %p871_p6 = pnand %p869_p5, %p859_p4  ;;  %p878_p10 = por %p877_p9, %p876_p8 }
  0x10   : > { %p872_p7 = pneg %p871_p6 }
  0x12   : > { %p879_p11 = pnand %p878_p10, %p872_p7 }
  0x14   : > { %882 = shalt.err (!%p879_p11)
}
  0x15   : > { %801 = dma.hbm_to_vmem [thread:$0]  (!%p1044_p3), %s1150_s1, 128, %s201_s16, %s1048_s20  }
  0x16   : > { %s1062_s25 = sadd.s32 4294967295, %s993_s14   ;;  %s35_s26 = sadd.s32 1, %s989_s13 }
  0x17   : > { %p37_p12 = scmp.ge.s32.totalorder %s35_s26, 2  ;;  %p761_p13 = scmp.ge.s32.totalorder %s993_s14, 1 }
  0x18   : > { %p158_p1 = scmp.lt.s32.totalorder %s993_s14, 3  ;;  %p1153_p5 = scmp.eq.s32.totalorder %s1062_s25, 0 }
  0x19   : > { %s1167_s26 = smov (%p37_p12, %s35_s26), 0  ;;  %s996_s28 = smov [#allocation4]  }
  0x1a   : > { %p1069_p2 = pnand %p761_p13, %p158_p1  ;;  %s176_s29 = sshll.u32 %s996_s28, 4  ;;  %s177_s29 = int_to_ptr.vmem [resolvable:$true] %s176_s29 }
  0x1b   : > { %s997_s30 = smov [#allocation9]  }
  0x1c   : > { %s1156_s27 = scalar_select %p1069_p2, 1, 0 }
  0x1d   : > { %p794_p6 = pneg %p1069_p2  ;;  %s220_s4 = sshll.u32 %s997_s30, 4  ;;  %s221_s4 = int_to_ptr.vmem [resolvable:$true] %s220_s4 }
  0x1e   : > { %s894_s6 = scalar_lea.vmem %s221_s4, 128  ;;  %s901_s7 = scalar_lea.vmem %s221_s4, 256 }
  0x1f   : > { %p1078_p7 = pnand %p1153_p5, %p794_p6  ;;  %p895_p8 = scmp.ne.s32.totalorder %s221_s4, %s894_s6 }
  0x20   : > { %p902_p11 = scmp.lt.s32.totalorder %s221_s4, %s221_s4  ;;  %p903_p12 = scmp.lt.s32.totalorder %s901_s7, %s894_s6 }
  0x21   : > { %p897_p9 = pnand %p895_p8, %p859_p4 }
  0x22   : > { %p904_p13 = por %p903_p12, %p902_p11 }
  0x23   : > { %p898_p10 = pneg %p897_p9 }
  0x25   : > { %p905_p1 = pnand %p904_p13, %p898_p10 }
  0x27   : > { %908 = shalt.err (!%p905_p1)
}
  0x28   : > { %804 = dma.hbm_to_vmem [thread:$0]  (!%p1044_p3), %s1151_s2, 128, %s221_s4, %s1048_s20  }
  0x29   : > { %p911_p6 = pneg %p1078_p7  ;;  %s920_s10 = scalar_lea.vmem %s177_s29, 256 }
  0x2a   : > { %p921_p0 = scmp.ne.s32.totalorder %s177_s29, %s920_s10  ;;  %p928_p9 = scmp.lt.s32.totalorder %s177_s29, %s177_s29 }
  0x2b   : > { %p929_p5 = scmp.lt.s32.totalorder %s920_s10, %s920_s10 }
  0x2c   : > { %p923_p4 = pnand %p921_p0, %p911_p6 }
  0x2d   : > { %p930_p2 = por %p929_p5, %p928_p9 }
  0x2e   : > { %p924_p8 = pneg %p923_p4 }
  0x30   : > { %p931_p11 = pnand %p930_p2, %p924_p8 }
  0x32   : > { %934 = shalt.err (!%p931_p11)
}
  0x33   : > { %797 = dma.hbm_to_vmem [thread:$0]  (!%p1078_p7), %s1149_s0, 256, %s177_s29, [#allocation5]  }
  0x34   : > { %p1158_p10 = scmp.ne.s32.totalorder %s1156_s27, 0 }
  0x35   : > { %p1159_p3 = scmp.eq.s32.totalorder (!%p1158_p10), %s1062_s25, 0 }
  0x36   : > { %229 = sbr.rel (%p1158_p10) target bundleno = 431 (0x1af), region = 32 }
  0x3b   : > { %972 = dma.done.wait (%p1159_p3), [#allocation5], 256   ;;  %p1160_p0 = pmov %p1159_p3 }
  0x3c   : > { %s235_s16 = sand.u32 1, %s1062_s25  }
  0x3d   : > { %974 = vsyncadd (%p1160_p0), [#allocation5], 4294967040  ;;  %s236_s18 = scalar_lea.sflag [#allocation8], %s235_s16  ;;  %p1161_p2 = pmov %p1160_p0 }
  0x3e   : > { %p1162_p5 = pmov %p1160_p0 }
  0x3f   : > { %976 = dma.done.wait (%p1161_p2), %s236_s18, 256  }
  0x40   : > { %978 = vsyncadd (%p1162_p5), %s236_s18, 4294967040  ;;  %p283_p7 = scmp.eq.s32.totalorder %s985_s12, 0 }
  0x41   : > { %vm289_vm0 = vcmask (%p283_p7), 1024   ;;  %v998_v0 = vmov (%p283_p7), 0.0  }
  0x42   : > { %288 = sbr.rel (!%p283_p7) target bundleno = 71 (0x47), region = 48  ;;  %290 = vst.msk [vmem:[#allocation2] sm:$0x3] (%p283_p7), %vm289_vm0, %v998_v0  ;;  %291 = vst.msk [vmem:[#allocation3] sm:$0x3] (%p283_p7), %vm289_vm0, %v998_v0 }
  0x47 PF: > { %p771_p12 = scmp.ne.s32.totalorder %s985_s12, 0 }
  0x49   : > { %294 = sbr.rel (%p771_p12) target bundleno = 249 (0xf9), region = 52 }
  0x4e   : > { %v304_v1 = vlaneseq  ;;  %v295_v2 = vld [vmem:[#allocation4] sm:$0xff]  ;;  %v999_v3 = vmov 1983009808   ;;  %v296_v11 = vld [vmem:[#allocation4 + $0x8] sm:$0xff]  ;;  %vm342_vm1 = vcmask 1041408   ;;  %vm361_vm2 = vcmask 1024  }
  0x4f   : > { %v302_v4 = vunpack.c.l.s4 %v999_v3  ;;  %v364_v6 = vmul.f32 %v295_v2, %v295_v2  ;;  %v300_v7 = vcombine.high %v295_v2, %v295_v2  ;;  %v365_v14 = vmul.f32 %v296_v11, %v296_v11  ;;  %v297_v61 = vld [vmem:[#allocation2] sm:$0x3]  ;;  %v363_v0 = vld [vmem:[#allocation3] sm:$0x3] }
  0x50   : > { %v305_v5 = vshrl.u32 %v304_v1, 7  ;;  %v317_v19 = vcombine.high %v296_v11, %v296_v11 }
  0x51   : > { %v303_v8 = vunpack.c.0.s8 %v302_v4  ;;  %v368_v9 = vcombine.high %v364_v6, %v364_v6  ;;  %v385_v24 = vcombine.high %v365_v14, %v365_v14 }
  0x53   : > { %v306_v10 = vsub.s32 %v303_v8, %v305_v5 }
  0x55   : > { %v307_v12 = vrot.slane %v295_v2, %v306_v10  ;;  %v314_v13 = vrot.slane %v300_v7, %v306_v10  ;;  %v375_v15 = vrot.slane %v364_v6, %v306_v10  ;;  %v382_v16 = vrot.slane %v368_v9, %v306_v10 }
  0x56   : > { %v324_v20 = vrot.slane %v296_v11, %v306_v10  ;;  %v392_v28 = vrot.slane %v365_v14, %v306_v10  ;;  %v331_v29 = vrot.slane %v317_v19, %v306_v10  ;;  %v399_v39 = vrot.slane %v385_v24, %v306_v10 }
  0x57   : > { %v315_v17 = vcombine.high %v307_v12, %v307_v12  ;;  %v316_v18 = vcombine.high %v314_v13, %v314_v13  ;;  %v343_v21 = vsel %vm342_vm1, %v307_v12, 0.0  ;;  %v346_v23 = vsel %vm342_vm1, %v314_v13, 0.0 }
  0x58   : > { %v383_v26 = vcombine.high %v375_v15, %v375_v15  ;;  %v384_v27 = vcombine.high %v382_v16, %v382_v16  ;;  %v332_v30 = vcombine.high %v324_v20, %v324_v20  ;;  %v410_v32 = vsel %vm342_vm1, %v375_v15, 0.0 }
  0x59   : > { %v344_v22 = vsel %vm342_vm1, %v315_v17, 0.0  ;;  %v348_v31 = vsel %vm342_vm1, %v316_v18, 0.0  ;;  %v413_v35 = vsel %vm342_vm1, %v382_v16, 0.0  ;;  %v350_v36 = vsel %vm342_vm1, %v324_v20, 0.0 }
  0x5a   : > { %v345_v25 = vadd.f32 %v344_v22, %v343_v21  ;;  %v411_v34 = vsel %vm342_vm1, %v383_v26, 0.0  ;;  %v400_v40 = vcombine.high %v392_v28, %v392_v28  ;;  %v415_v41 = vsel %vm342_vm1, %v384_v27, 0.0 }
  0x5b   : > { %v412_v37 = vadd.f32 %v411_v34, %v410_v32  ;;  %v333_v42 = vcombine.high %v331_v29, %v331_v29  ;;  %v352_v43 = vsel %vm342_vm1, %v332_v30, 0.0  ;;  %v417_v46 = vsel %vm342_vm1, %v392_v28, 0.0 }
  0x5c   : > { %v347_v33 = vadd.f32 %v346_v23, %v345_v25  ;;  %v354_v47 = vsel %vm342_vm1, %v331_v29, 0.0  ;;  %v401_v50 = vcombine.high %v399_v39, %v399_v39  ;;  %v419_v51 = vsel %vm342_vm1, %v400_v40, 0.0 }
  0x5d   : > { %v414_v44 = vadd.f32 %v413_v35, %v412_v37  ;;  %v356_v52 = vsel %vm342_vm1, %v333_v42, 0.0  ;;  %v421_v55 = vsel %vm342_vm1, %v399_v39, 0.0 }
  0x5e   : > { %v349_v38 = vadd.f32 %v348_v31, %v347_v33  ;;  %v423_v58 = vsel %vm342_vm1, %v401_v50, 0.0 }
  0x5f   : > { %v416_v48 = vadd.f32 %v415_v41, %v414_v44 }
  0x60   : > { %v351_v45 = vadd.f32 %v350_v36, %v349_v38 }
  0x61   : > { %v418_v53 = vadd.f32 %v417_v46, %v416_v48 }
  0x62   : > { %v353_v49 = vadd.f32 %v352_v43, %v351_v45 }
  0x63   : > { %v420_v56 = vadd.f32 %v419_v51, %v418_v53 }
  0x64   : > { %v355_v54 = vadd.f32 %v354_v47, %v353_v49 }
  0x65   : > { %v422_v59 = vadd.f32 %v421_v55, %v420_v56 }
  0x66   : > { %v357_v57 = vadd.f32 %v356_v52, %v355_v54 }
  0x67   : > { %v424_v60 = vadd.f32 %v423_v58, %v422_v59 }
  0x68   : > { %358 = vadd.xlane.f32.xlu0 %v357_v57 }
  0x6c   : > { %425 = vadd.xlane.f32.xlu0 %v424_v60 }
  0xf1   : > { %v359_v62 = vpop.xlane.xlu0 %358 }
  0xf2   : > { %v360_v63 = vadd.f32 %v359_v62, %v297_v61 }
  0xf4   : > { %362 = vst.msk [vmem:[#allocation2] sm:$0x3] %vm361_vm2, %v360_v63 }
  0xf5   : > { %v426_v1 = vpop.xlane.xlu0 %425 }
  0xf6   : > { %v427_v2 = vadd.f32 %v426_v1, %v363_v0 }
  0xf8   : > { %428 = vst.msk [vmem:[#allocation3] sm:$0x3] %vm361_vm2, %v427_v2 }
  0xf9 PF: > { %p772_p13 = scmp.ne.s32.totalorder %s985_s12, 1 }
  0xfb   : > { %432 = sbr.rel (%p772_p13) target bundleno = 418 (0x1a2), region = 56 }
 0x100   : > { %v433_v3 = vld [vmem:[#allocation2] sm:$0x3]  ;;  %v435_v4 = vld [vmem:[#allocation3] sm:$0x3]  ;;  %v1000_v5 = vmov 0   ;;  %v453_v15 = vlaneseq  ;;  %v474_v20 = vld [vmem:[#allocation7] sm:$0xff] }
 0x101   : > { %854 = vset.pattern.permute.xlu0 %v1000_v5  ;;  %v434_v6 = vmul.f32 0.0009765625, %v433_v3  ;;  %v436_v7 = vmul.f32 0.0009765625, %v435_v4  ;;  %v1001_v17 = vmov 269488144   ;;  %v1002_v24 = vmov 1983009808  }
 0x102   : > { %v454_v16 = vshrl.u32 %v453_v15, 7  ;;  %v451_v18 = vunpack.c.l.s4 %v1001_v17  ;;  %v511_v25 = vunpack.c.l.s4 %v1002_v24  ;;  %v546_v32 = vld [vmem:[#allocation9] sm:$0xff]  ;;  %v445_v2 = vld [vmem:[#allocation4 + $0x8] sm:$0xff] }
 0x103   : > { %v437_v8 = vmul.f32 %v434_v6, %v434_v6  ;;  %v442_v12 = vsub.f32 0.0, %v434_v6  ;;  %v444_v1 = vld [vmem:[#allocation4] sm:$0xff] }
 0x104   : > { %v478_v19 = vsub.s32 0, %v454_v16  ;;  %v482_v21 = vsub.s32 1, %v454_v16  ;;  %v486_v22 = vsub.s32 2, %v454_v16  ;;  %v490_v23 = vsub.s32 3, %v454_v16 }
 0x105   : > { %v438_v9 = vsub.f32 %v436_v7, %v437_v8  ;;  %v494_v26 = vsub.s32 4, %v454_v16  ;;  %v498_v27 = vsub.s32 5, %v454_v16  ;;  %v502_v28 = vsub.s32 6, %v454_v16 }
 0x106   : > { %v506_v29 = vsub.s32 7, %v454_v16  ;;  %v452_v30 = vunpack.c.0.s8 %v451_v18  ;;  %v479_v31 = vrot.slane %v474_v20, %v478_v19  ;;  %v483_v33 = vrot.slane %v474_v20, %v482_v21 }
 0x107   : > { %v439_v10 = vmax.f32 %v438_v9, 0.0  ;;  %v487_v34 = vrot.slane %v474_v20, %v486_v22  ;;  %v491_v35 = vrot.slane %v474_v20, %v490_v23  ;;  %v512_v36 = vunpack.c.0.s8 %v511_v25 }
 0x108   : > { %v495_v37 = vrot.slane %v474_v20, %v494_v26  ;;  %v499_v38 = vrot.slane %v474_v20, %v498_v27  ;;  %v503_v39 = vrot.slane %v474_v20, %v502_v28  ;;  %v507_v40 = vrot.slane %v474_v20, %v506_v29 }
 0x109   : > { %v440_v11 = vadd.f32 1e-05, %v439_v10  ;;  %v551_v41 = vrot.slane %v546_v32, %v478_v19  ;;  %v555_v42 = vrot.slane %v546_v32, %v482_v21  ;;  %v559_v43 = vrot.slane %v546_v32, %v486_v22 }
 0x10a   : > { %v563_v44 = vrot.slane %v546_v32, %v490_v23  ;;  %v567_v45 = vrot.slane %v546_v32, %v494_v26  ;;  %v571_v46 = vrot.slane %v546_v32, %v498_v27  ;;  %v575_v47 = vrot.slane %v546_v32, %v502_v28 }
 0x10b   : > { %855 = vrsqrt.f32 %v440_v11  ;;  %v579_v48 = vrot.slane %v546_v32, %v506_v29  ;;  %v508_v49 = vcombine.low %v479_v31, %v483_v33  ;;  %v509_v50 = vcombine.low %v487_v34, %v491_v35 }
 0x10c   : > { %v515_v51 = vsub.s32 %v512_v36, %v454_v16  ;;  %v455_v52 = vsub.s32 %v452_v30, %v454_v16  ;;  %v525_v53 = vcombine.low %v495_v37, %v499_v38  ;;  %v526_v54 = vcombine.low %v503_v39, %v507_v40 }
 0x10d   : > { %v580_v55 = vcombine.low %v551_v41, %v555_v42  ;;  %v581_v56 = vcombine.low %v559_v43, %v563_v44  ;;  %v597_v57 = vcombine.low %v567_v45, %v571_v46  ;;  %v598_v58 = vcombine.low %v575_v47, %v579_v48 }
 0x10e   : > { %v516_v60 = vrot.slane %v508_v49, %v515_v51  ;;  %v523_v61 = vrot.slane %v509_v50, %v515_v51  ;;  %v533_v63 = vrot.slane %v525_v53, %v515_v51  ;;  %v540_v0 = vrot.slane %v526_v54, %v515_v51 }
 0x10f   : > { %v588_v3 = vrot.slane %v580_v55, %v515_v51  ;;  %v595_v4 = vrot.slane %v581_v56, %v515_v51  ;;  %v605_v5 = vrot.slane %v597_v57, %v515_v51  ;;  %v612_v6 = vrot.slane %v598_v58, %v515_v51 }
 0x110   : > { %v524_v7 = vcombine.low %v516_v60, %v523_v61  ;;  %v541_v11 = vcombine.low %v533_v63, %v540_v0 }
 0x118   : > { %v856_v13 = vpop.eup %855 }
 0x119   : > { %448 = vperm.xlu0 %854, %v856_v13   ;;  %v443_v14 = vmul.f32 %v856_v13, %v442_v12  ;;  %v596_v13 = vcombine.low %v588_v3, %v595_v4 }
 0x11d   : > { %462 = vperm.xlu0 %854, %v443_v14   ;;  %v613_v14 = vcombine.low %v605_v5, %v612_v6 }
 0x194   : > { %v449_v59 = vpop.permute.xlu0 %448 }
 0x195   : > { %v456_v62 = vrot.slane %v449_v59, %v455_v52 }
 0x197   : > { %v458_v9 = vmul.f32 %v456_v62, %v444_v1  ;;  %v459_v10 = vmul.f32 %v456_v62, %v445_v2 }
 0x198   : > { %v463_v8 = vpop.permute.xlu0 %462 }
 0x199   : > { %v470_v12 = vrot.slane %v463_v8, %v455_v52 }
 0x19b   : > { %v472_v15 = vadd.f32 %v470_v12, %v458_v9  ;;  %v473_v16 = vadd.f32 %v470_v12, %v459_v10 }
 0x19d   : > { %v544_v17 = vmul.f32 %v524_v7, %v472_v15  ;;  %v545_v18 = vmul.f32 %v541_v11, %v473_v16 }
 0x19f   : > { %v616_v19 = vadd.f32 %v596_v13, %v544_v17  ;;  %v617_v20 = vadd.f32 %v613_v14, %v545_v18 }
 0x1a1   : > { %618 = vst [vmem:[#allocation10] sm:$0xff] %v616_v19  ;;  %619 = vst [vmem:[#allocation10 + $0x8] sm:$0xff] %v617_v20 }
 0x1a2 PF: > { %p816_p1 = scmp.eq.s32.totalorder %s1062_s25, 1  ;;  %s1003_s12 = smov [#allocation10]  }
 0x1a3   : > { %s638_s19 = sshll.u32 %s1003_s12, 4  ;;  %s639_s19 = int_to_ptr.vmem [resolvable:$true] %s638_s19 }
 0x1a4   : > { %s935_s20 = scalar_lea.vmem %s639_s19, 256  ;;  %s941_s21 = scalar_lea.vmem %s639_s19, 512 }
 0x1a5   : > { %p936_p6 = scmp.ne.s32.totalorder %s639_s19, %s935_s20  ;;  %p942_p9 = scmp.lt.s32.totalorder %s639_s19, %s639_s19 }
 0x1a6   : > { %p943_p11 = scmp.lt.s32.totalorder %s941_s21, %s935_s20 }
 0x1a7   : > { %p937_p4 = pnand %p936_p6, %p816_p1 }
 0x1a8   : > { %p944_p10 = por %p943_p11, %p942_p9 }
 0x1a9   : > { %p938_p8 = pneg %p937_p4 }
 0x1ab   : > { %p945_p3 = pnand %p944_p10, %p938_p8 }
 0x1ad   : > { %948 = shalt.err (!%p945_p3)
}
 0x1ae   : > { %791 = dma.vmem_to_hbm [thread:$0]  (%p816_p1), %s639_s19, 256, %s1152_s3, [#allocation6]  }
 0x1af PF: > { %p818_p0 = scmp.eq.s32.totalorder %s760_s17, 1  ;;  %p1163_p2 = scmp.ge.s32.totalorder %s993_s14, 2 }
 0x1b1   : > { %p806_p5 = pnand %p818_p0, %p1163_p2 }
 0x1b3   : > { %p807_p7 = pneg %p806_p5 }
 0x1b5   : > { %980 = dma.done.wait (%p807_p7), [#allocation6], 256  }
 0x1b6   : > { %982 = vsyncadd (%p807_p7), [#allocation6], 4294967040  ;;  %s20_s14 = sadd.s32 1, %s993_s14   ;;  %s1164_s12 = smov %s989_s13 }
 0x1b7   : > { %p17_p12 = scmp.ge.s32.totalorder %s20_s14, 4   ;;  %s1165_s13 = smov %s1167_s26 }
 0x1b9   :  { %19 = sbr.rel (!%p17_p12) target bundleno = 6 (0x6), region = 106 }
 0x1be   :  { %656 = vsyncpa [#allocation5], 1 }
 0x1bf   :  { %658 = vsyncpa [#allocation5 + $0x1], 1 }
 0x1c0   :  { %659 = vsyncpa [#allocation8], 1 }
 0x1c1   :  { %661 = vsyncpa [#allocation8 + $0x1], 1 }
 0x1c2   :  { %662 = vsyncpa [#allocation6], 1 }
 0x1c3   :  { %664 = vsyncpa [#allocation6 + $0x1], 1 }

</bundles_post_ra>
